<compile_context>
chip_gen: v6e
topology: v6e:2x2x1
jax: 0.10.0
libtpu: 0.0.40
codegen_flags: <defaults>
</compile_context>

<pallas_src>
import functools
import math

import jax
import jax.numpy as jnp
from jax.experimental import pallas as pl
from jax.experimental.pallas import tpu as pltpu


def _make_kernel(k, channels, width, n_chunks, lambdas, init_v):
    C, W = channels, width
    lam = [float(v) for v in lambdas]
    ini = [float(v) for v in init_v]

    def kernel(x_ref, w1m_ref, b1_ref, w2t_ref, b2_ref, e_ref, o_ref):
        # --- coefficient path (tiny) -------------------------------------
        # FC1 applied to the per-batch channel mean: the mean-over-L reduction
        # is folded into w1m (= tile(w1.T, L) / L), so one (Bn, L*C) @ (L*C, H)
        # matmul does reduction + FC1.
        h = jnp.dot(x_ref[...], w1m_ref[...],
                    preferred_element_type=jnp.float32) + b1_ref[...]     # (Bn, H)
        h = jnp.maximum(h, 0.0)

        # FC2; 2*sigmoid(t) - 1 == tanh(t/2)  (single EUP op).
        theta = jnp.dot(h, w2t_ref[...],
                        preferred_element_type=jnp.float32) + b2_ref[...]  # (Bn, 2kC)
        theta = jnp.tanh(0.5 * theta)

        # theta was permuted host-side to j-major layout: slice j covers
        # channels [j*C, (j+1)*C). Expand each (Bn, C) coefficient only to one
        # W-wide lane group (W = lcm(C, 128)) via an exact 0/1 matmul; the
        # chunk loop below broadcasts it across the flat L*C axis, replacing
        # the old (C, L*C) MXU expansion and its (Bn, L*C) f32 temporaries.
        e = e_ref[...]                       # (C, W), exact 0/1 replication
        cdt = o_ref.dtype                    # elementwise compute dtype == x dtype
        slopes, biases = [], []
        for j in range(k):
            a = theta[:, j * C:(j + 1) * C] * lam[j] + ini[j]                    # (Bn, C)
            b = theta[:, (k + j) * C:(k + j + 1) * C] * lam[k + j] + ini[k + j]  # (Bn, C)
            slopes.append(jnp.dot(a, e, preferred_element_type=jnp.float32)
                          .astype(cdt))      # (Bn, W)
            biases.append(jnp.dot(b, e, preferred_element_type=jnp.float32)
                          .astype(cdt))      # (Bn, W)

        # --- main elementwise path: chunked fma + running max over j -------
        # W is a multiple of both C and (when possible) 128, so every chunk is
        # lane-aligned and every store is a full-width contiguous slab.
        for g in range(n_chunks):
            xg = x_ref[:, g * W:(g + 1) * W].astype(cdt)   # (Bn, W)
            og = xg * slopes[0] + biases[0]
            for j in range(1, k):
                og = jnp.maximum(og, xg * slopes[j] + biases[j])
            o_ref[:, g * W:(g + 1) * W] = og

    return kernel


def task_aware_pallas(x, w1, b1, w2, b2, *, k=2,
                      lambdas=(1.0, 1.0, 0.5, 0.5),
                      init_v=(1.0, 0.0, 0.0, 0.0),
                      block_n=None):
    """x: (N, L, C). w1: (H, C), b1: (H,), w2: (2kC, H), b2: (2kC,) (PyTorch Linear layout)."""
    N, L, C = x.shape
    H = w1.shape[0]
    K2C = 2 * k * C
    assert w2.shape == (K2C, H)
    LC = L * C
    itemsize = jnp.dtype(x.dtype).itemsize

    # ---- chunk width: multiple of C and (ideally) of 128, dividing L*C ----
    W = math.lcm(C, 128)
    if W > LC or LC % W != 0:
        W = LC                       # fallback: single full-width chunk (still exact)
    n_chunks = LC // W
    # NOTE: when L*C % 128 != 0 (fallback path) output stores become masked;
    # for typical configs (C a power of two, L a multiple of 128/C) they are
    # full-width unmasked vst.

    # ---- host-side weight preparation (tiny tensors, plain XLA ops) ----
    # Keep FC weights in f32 (exact); for bf16 activations feed bf16 to the
    # MXU for the big FC1 operand so no f32 copy of the x block is made.
    mxu_in_dtype = x.dtype if x.dtype == jnp.bfloat16 else jnp.float32
    w1t = w1.T.astype(jnp.float32)                        # (C, H)
    # Fold the mean-over-L into fc1: row (l*C + c) of w1m is w1.T[c] / L.
    w1m = (jnp.tile(w1t, (L, 1)) / float(L)).astype(mxu_in_dtype)   # (LC, H)
    # Permute fc2 output ordering from PyTorch's view(C, 2k) layout (c-major)
    # to (2k, C) (j-major) so the kernel takes contiguous channel slices.
    w2p = w2.reshape(C, 2 * k, H).transpose(1, 0, 2).reshape(K2C, H)
    b2p = b2.reshape(C, 2 * k).T.reshape(K2C)
    w2t = w2p.T.astype(jnp.float32)                       # (H, 2kC)
    b1r = b1.reshape(1, H).astype(jnp.float32)
    b2r = b2p.reshape(1, K2C).astype(jnp.float32)
    # Channel -> W-wide lane-group replication matrix: E[c, m*C + c'] = (c == c').
    e128 = jnp.tile(jnp.eye(C, dtype=jnp.float32), (1, W // C))     # (C, W)

    # ---- block sizing: ~2 MiB x-block, >= ~8 grid steps when N allows ----
    sublane = 32 // itemsize                              # 8 (f32) / 16 (bf16) / 32 (i8)
    if block_n is None:
        budget_bytes = 2 * 1024 * 1024
        rows = budget_bytes // max(1, LC * itemsize)
        block_n = max(sublane, min(1024, int(rows)))
        # Keep enough grid steps to feed both v7x TensorCores.
        target = pl.cdiv(N, 8)
        target = pl.cdiv(target, sublane) * sublane
        block_n = min(block_n, max(sublane, target))
        block_n = max(sublane, (block_n // sublane) * sublane)
    if block_n >= N:
        block_n = N                                       # block == full dim is allowed
    n_blocks = pl.cdiv(N, block_n)                        # ragged last block: Pallas
                                                          # pads reads / masks writes,
                                                          # no host pad / slice needed.

    # Flatten (L, C) into one lane-dense last dim (free reshape).
    x2 = x.reshape(N, LC)

    kernel = _make_kernel(k, C, W, n_chunks, lambdas, init_v)

    cost = pl.CostEstimate(
        flops=int(2 * N * LC * H + 2 * N * H * K2C
                  + 2 * N * 2 * k * C * W + (3 * k) * N * LC),
        transcendentals=int(N * K2C),
        bytes_accessed=int(2 * N * LC * itemsize
                           + (LC * H + H * K2C + C * W + H + K2C) * 4),
    )

    out2 = pl.pallas_call(
        kernel,
        out_shape=jax.ShapeDtypeStruct((N, LC), x.dtype),
        grid_spec=pltpu.PrefetchScalarGridSpec(
            num_scalar_prefetch=0,
            grid=(n_blocks,),
            in_specs=[
                pl.BlockSpec((block_n, LC), lambda n: (n, 0)),
                pl.BlockSpec((LC, H), lambda n: (0, 0)),
                pl.BlockSpec((1, H), lambda n: (0, 0)),
                pl.BlockSpec((H, K2C), lambda n: (0, 0)),
                pl.BlockSpec((1, K2C), lambda n: (0, 0)),
                pl.BlockSpec((C, W), lambda n: (0, 0)),
            ],
            out_specs=pl.BlockSpec((block_n, LC), lambda n: (n, 0)),
        ),
        compiler_params=pltpu.CompilerParams(
            dimension_semantics=("parallel",),
            vmem_limit_bytes=32 * 1024 * 1024,   # safe on v7x's 64 MiB VMEM/TC
        ),
        cost_estimate=cost,
    )(x2, w1m, b1r, w2t, b2r, e128)

    return out2.reshape(N, L, C)


def task_aware_ref(x, w1, b1, w2, b2, *, k=2,
                   lambdas=(1.0, 1.0, 0.5, 0.5),
                   init_v=(1.0, 0.0, 0.0, 0.0)):
    """Pure-JAX reference mirroring the PyTorch forward exactly."""
    N, L, C = x.shape
    lam = jnp.asarray(lambdas, jnp.float32)
    ini = jnp.asarray(init_v, jnp.float32)
    mean = jnp.mean(x.astype(jnp.float32), axis=1)               # (N, C)
    h = jnp.maximum(mean @ w1.T + b1, 0.0)
    theta = h @ w2.T + b2
    theta = 2.0 * jax.nn.sigmoid(theta) - 1.0
    relu_coefs = theta.reshape(-1, C, 2 * k) * lam + ini         # (N, C, 2k)
    x_perm = jnp.transpose(x, (1, 0, 2))[..., None]              # (L, N, C, 1)
    out = x_perm * relu_coefs[:, :, :k] + relu_coefs[:, :, k:]   # (L, N, C, k)
    res = jnp.max(out, axis=-1)                                  # (L, N, C)
    return jnp.transpose(res, (1, 0, 2)).astype(x.dtype)         # (N, L, C)


if __name__ == "__main__":
    # Small shapes consistent with the module: channels=32, reduction_rate=8, k=2.
    N, L, C = 2, 8, 32
    RR, K = 8, 2
    H = C // RR
    K2C = 2 * K * C

    key = jax.random.PRNGKey(0)
    kx, k1, k2, k3, k4 = jax.random.split(key, 5)
    x = jax.random.normal(kx, (N, L, C), dtype=jnp.float32)
    w1 = jax.random.normal(k1, (H, C), dtype=jnp.float32) * 0.1
    b1 = jax.random.normal(k2, (H,), dtype=jnp.float32) * 0.1
    w2 = jax.random.normal(k3, (K2C, H), dtype=jnp.float32) * 0.1
    b2 = jax.random.normal(k4, (K2C,), dtype=jnp.float32) * 0.1

    run = functools.partial(task_aware_pallas, k=K)
    out = jax.block_until_ready(jax.jit(run)(x, w1, b1, w2, b2))

    ref = task_aware_ref(x, w1, b1, w2, b2, k=K)
    assert out.shape == (N, L, C)
    assert jnp.allclose(out, ref, atol=1e-5, rtol=1e-5), "mismatch vs reference"
    print("KERNEL_OK")
</pallas_src>

<mosaic_0001>
module attributes {stable_mosaic.version = 11 : i64} {
  func.func @kernel(%arg0: i32, %arg1: memref<2x256xf32, #tpu.memory_space<vmem>>, %arg2: memref<256x4xf32, #tpu.memory_space<vmem>>, %arg3: memref<1x4xf32, #tpu.memory_space<vmem>>, %arg4: memref<4x128xf32, #tpu.memory_space<vmem>>, %arg5: memref<1x128xf32, #tpu.memory_space<vmem>>, %arg6: memref<32x128xf32, #tpu.memory_space<vmem>>, %arg7: memref<2x256xf32, #tpu.memory_space<vmem>>) attributes {dimension_semantics = [#tpu.dimension_semantics<parallel>], iteration_bounds = array<i64: 1>, scalar_prefetch = 0 : i64, scratch_operands = 0 : i64, tpu.core_type = #tpu.core_type<tc>, window_params = [{transform_indices = @transform_0, window_bounds = array<i64: 2, 256>}, {pipeline_mode = #tpu.pipeline_mode<synchronous>, transform_indices = @transform_1, window_bounds = array<i64: 256, 4>}, {pipeline_mode = #tpu.pipeline_mode<synchronous>, transform_indices = @transform_2, window_bounds = array<i64: 1, 4>}, {pipeline_mode = #tpu.pipeline_mode<synchronous>, transform_indices = @transform_3, window_bounds = array<i64: 4, 128>}, {pipeline_mode = #tpu.pipeline_mode<synchronous>, transform_indices = @transform_4, window_bounds = array<i64: 1, 128>}, {pipeline_mode = #tpu.pipeline_mode<synchronous>, transform_indices = @transform_5, window_bounds = array<i64: 32, 128>}, {transform_indices = @transform_6, window_bounds = array<i64: 2, 256>}]} {
    %c0 = arith.constant 0 : index
    %c0_0 = arith.constant 0 : index
    %0 = vector.load %arg1[%c0, %c0_0] : memref<2x256xf32, #tpu.memory_space<vmem>>, vector<2x256xf32>
    %c0_1 = arith.constant 0 : index
    %c0_2 = arith.constant 0 : index
    %1 = vector.load %arg2[%c0_1, %c0_2] : memref<256x4xf32, #tpu.memory_space<vmem>>, vector<256x4xf32>
    %cst = arith.constant dense<0.000000e+00> : vector<2x4xf32>
    %2 = tpu.matmul %0, %1, %cst {dimension_numbers = #tpu.dot_dimension_numbers<[1], [0], [0], [1], [0, 0, 1, 1], [], []>} : vector<2x256xf32>, vector<256x4xf32>, vector<2x4xf32> -> vector<2x4xf32>
    %c0_3 = arith.constant 0 : index
    %c0_4 = arith.constant 0 : index
    %3 = vector.load %arg3[%c0_3, %c0_4] : memref<1x4xf32, #tpu.memory_space<vmem>>, vector<1x4xf32>
    %4 = vector.broadcast %3 : vector<1x4xf32> to vector<2x4xf32>
    %5 = arith.addf %2, %4 : vector<2x4xf32>
    %cst_5 = arith.constant 0.000000e+00 : f32
    %6 = vector.broadcast %cst_5 : f32 to vector<2x4xf32>
    %7 = arith.maximumf %5, %6 : vector<2x4xf32>
    %c0_6 = arith.constant 0 : index
    %c0_7 = arith.constant 0 : index
    %8 = vector.load %arg4[%c0_6, %c0_7] : memref<4x128xf32, #tpu.memory_space<vmem>>, vector<4x128xf32>
    %cst_8 = arith.constant dense<0.000000e+00> : vector<2x128xf32>
    %9 = tpu.matmul %7, %8, %cst_8 {dimension_numbers = #tpu.dot_dimension_numbers<[1], [0], [0], [1], [0, 0, 1, 1], [], []>} : vector<2x4xf32>, vector<4x128xf32>, vector<2x128xf32> -> vector<2x128xf32>
    %c0_9 = arith.constant 0 : index
    %c0_10 = arith.constant 0 : index
    %10 = vector.load %arg5[%c0_9, %c0_10] : memref<1x128xf32, #tpu.memory_space<vmem>>, vector<1x128xf32>
    %11 = vector.broadcast %10 : vector<1x128xf32> to vector<2x128xf32>
    %12 = arith.addf %9, %11 : vector<2x128xf32>
    %cst_11 = arith.constant 5.000000e-01 : f32
    %13 = vector.broadcast %cst_11 : f32 to vector<2x128xf32>
    %14 = arith.mulf %13, %12 : vector<2x128xf32>
    %15 = math.tanh %14 : vector<2x128xf32>
    %c0_12 = arith.constant 0 : index
    %c0_13 = arith.constant 0 : index
    %16 = vector.load %arg6[%c0_12, %c0_13] : memref<32x128xf32, #tpu.memory_space<vmem>>, vector<32x128xf32>
    %17 = vector.extract_strided_slice %15 {offsets = [0, 0], sizes = [2, 32], strides = [1, 1]} : vector<2x128xf32> to vector<2x32xf32>
    %cst_14 = arith.constant 1.000000e+00 : f32
    %18 = vector.broadcast %cst_14 : f32 to vector<2x32xf32>
    %19 = arith.mulf %17, %18 : vector<2x32xf32>
    %cst_15 = arith.constant 1.000000e+00 : f32
    %20 = vector.broadcast %cst_15 : f32 to vector<2x32xf32>
    %21 = arith.addf %19, %20 : vector<2x32xf32>
    %22 = vector.extract_strided_slice %15 {offsets = [0, 64], sizes = [2, 32], strides = [1, 1]} : vector<2x128xf32> to vector<2x32xf32>
    %cst_16 = arith.constant 5.000000e-01 : f32
    %23 = vector.broadcast %cst_16 : f32 to vector<2x32xf32>
    %24 = arith.mulf %22, %23 : vector<2x32xf32>
    %cst_17 = arith.constant 0.000000e+00 : f32
    %25 = vector.broadcast %cst_17 : f32 to vector<2x32xf32>
    %26 = arith.addf %24, %25 : vector<2x32xf32>
    %cst_18 = arith.constant dense<0.000000e+00> : vector<2x128xf32>
    %27 = tpu.matmul %21, %16, %cst_18 {dimension_numbers = #tpu.dot_dimension_numbers<[1], [0], [0], [1], [0, 0, 1, 1], [], []>} : vector<2x32xf32>, vector<32x128xf32>, vector<2x128xf32> -> vector<2x128xf32>
    %cst_19 = arith.constant dense<0.000000e+00> : vector<2x128xf32>
    %28 = tpu.matmul %26, %16, %cst_19 {dimension_numbers = #tpu.dot_dimension_numbers<[1], [0], [0], [1], [0, 0, 1, 1], [], []>} : vector<2x32xf32>, vector<32x128xf32>, vector<2x128xf32> -> vector<2x128xf32>
    %29 = vector.extract_strided_slice %15 {offsets = [0, 32], sizes = [2, 32], strides = [1, 1]} : vector<2x128xf32> to vector<2x32xf32>
    %cst_20 = arith.constant 1.000000e+00 : f32
    %30 = vector.broadcast %cst_20 : f32 to vector<2x32xf32>
    %31 = arith.mulf %29, %30 : vector<2x32xf32>
    %cst_21 = arith.constant 0.000000e+00 : f32
    %32 = vector.broadcast %cst_21 : f32 to vector<2x32xf32>
    %33 = arith.addf %31, %32 : vector<2x32xf32>
    %34 = vector.extract_strided_slice %15 {offsets = [0, 96], sizes = [2, 32], strides = [1, 1]} : vector<2x128xf32> to vector<2x32xf32>
    %cst_22 = arith.constant 5.000000e-01 : f32
    %35 = vector.broadcast %cst_22 : f32 to vector<2x32xf32>
    %36 = arith.mulf %34, %35 : vector<2x32xf32>
    %cst_23 = arith.constant 0.000000e+00 : f32
    %37 = vector.broadcast %cst_23 : f32 to vector<2x32xf32>
    %38 = arith.addf %36, %37 : vector<2x32xf32>
    %cst_24 = arith.constant dense<0.000000e+00> : vector<2x128xf32>
    %39 = tpu.matmul %33, %16, %cst_24 {dimension_numbers = #tpu.dot_dimension_numbers<[1], [0], [0], [1], [0, 0, 1, 1], [], []>} : vector<2x32xf32>, vector<32x128xf32>, vector<2x128xf32> -> vector<2x128xf32>
    %cst_25 = arith.constant dense<0.000000e+00> : vector<2x128xf32>
    %40 = tpu.matmul %38, %16, %cst_25 {dimension_numbers = #tpu.dot_dimension_numbers<[1], [0], [0], [1], [0, 0, 1, 1], [], []>} : vector<2x32xf32>, vector<32x128xf32>, vector<2x128xf32> -> vector<2x128xf32>
    %c0_26 = arith.constant 0 : index
    %c0_27 = arith.constant 0 : index
    %41 = vector.load %arg1[%c0_26, %c0_27] : memref<2x256xf32, #tpu.memory_space<vmem>>, vector<2x128xf32>
    %42 = arith.mulf %41, %27 : vector<2x128xf32>
    %43 = arith.addf %42, %28 : vector<2x128xf32>
    %44 = arith.mulf %41, %39 : vector<2x128xf32>
    %45 = arith.addf %44, %40 : vector<2x128xf32>
    %46 = arith.maximumf %43, %45 : vector<2x128xf32>
    %c0_28 = arith.constant 0 : index
    %c0_29 = arith.constant 0 : index
    %47 = vector.load %arg7[%c0_28, %c0_29] : memref<2x256xf32, #tpu.memory_space<vmem>>, vector<2x128xf32>
    tpu.vector_store %arg7[%c0_28, %c0_29], %46 {strides = array<i32>} : memref<2x256xf32, #tpu.memory_space<vmem>>, vector<2x128xf32>,
    %c0_30 = arith.constant 0 : index
    %c128 = arith.constant 128 : index
    %48 = vector.load %arg1[%c0_30, %c128] : memref<2x256xf32, #tpu.memory_space<vmem>>, vector<2x128xf32>
    %49 = arith.mulf %48, %27 : vector<2x128xf32>
    %50 = arith.addf %49, %28 : vector<2x128xf32>
    %51 = arith.mulf %48, %39 : vector<2x128xf32>
    %52 = arith.addf %51, %40 : vector<2x128xf32>
    %53 = arith.maximumf %50, %52 : vector<2x128xf32>
    %c0_31 = arith.constant 0 : index
    %c128_32 = arith.constant 128 : index
    %54 = vector.load %arg7[%c0_31, %c128_32] : memref<2x256xf32, #tpu.memory_space<vmem>>, vector<2x128xf32>
    tpu.vector_store %arg7[%c0_31, %c128_32], %53 {strides = array<i32>} : memref<2x256xf32, #tpu.memory_space<vmem>>, vector<2x128xf32>,
    return
  }
  func.func @transform_0(%arg0: i32) -> (i32, i32) {
    %c0_i32 = arith.constant 0 : i32
    %c0_i32_0 = arith.constant 0 : i32
    return %arg0, %c0_i32 : i32, i32
  }
  func.func @transform_1(%arg0: i32) -> (i32, i32) {
    %c0_i32 = arith.constant 0 : i32
    %c0_i32_0 = arith.constant 0 : i32
    %c0_i32_1 = arith.constant 0 : i32
    return %c0_i32, %c0_i32_0 : i32, i32
  }
  func.func @transform_2(%arg0: i32) -> (i32, i32) {
    %c0_i32 = arith.constant 0 : i32
    %c0_i32_0 = arith.constant 0 : i32
    %c0_i32_1 = arith.constant 0 : i32
    return %c0_i32, %c0_i32_0 : i32, i32
  }
  func.func @transform_3(%arg0: i32) -> (i32, i32) {
    %c0_i32 = arith.constant 0 : i32
    %c0_i32_0 = arith.constant 0 : i32
    %c0_i32_1 = arith.constant 0 : i32
    return %c0_i32, %c0_i32_0 : i32, i32
  }
  func.func @transform_4(%arg0: i32) -> (i32, i32) {
    %c0_i32 = arith.constant 0 : i32
    %c0_i32_0 = arith.constant 0 : i32
    %c0_i32_1 = arith.constant 0 : i32
    return %c0_i32, %c0_i32_0 : i32, i32
  }
  func.func @transform_5(%arg0: i32) -> (i32, i32) {
    %c0_i32 = arith.constant 0 : i32
    %c0_i32_0 = arith.constant 0 : i32
    %c0_i32_1 = arith.constant 0 : i32
    return %c0_i32, %c0_i32_0 : i32, i32
  }
  func.func @transform_6(%arg0: i32) -> (i32, i32) {
    %c0_i32 = arith.constant 0 : i32
    %c0_i32_0 = arith.constant 0 : i32
    return %arg0, %c0_i32 : i32, i32
  }
}

</mosaic_0001>

<bundles_post_ra>
// kernel: tile.19
= control target key start
LH: loop header
LB: loop body
LE: loop exit
PB: predicated region body
PF: predicated region fallthrough
CT: control target
= control target key end

     0   :  { %vm163_vm0 = vcmask 1047556   ;;  %s399_s10 = smov 96   ;;  %vm165_vm1 = vcmask 261120   ;;  %s401_s21 = smov 32   ;;  %vm202_vm2 = vcmask 1048320   ;;  %vm245_vm3 = vcmask 785920   ;;  %s580_s0 = inlined_call_operand.vmem [shape: f32[32,4,32], index: 0, kind: input, shape index: {}]   ;;  %s581_s1 = inlined_call_operand.vmem [shape: f32[32,128], index: 1, kind: output, shape index: {}]  }
   0x1   :  { %v377_v0 = vld [vmem:[%s580_s0 + $0x1c] sm:$0xf]  ;;  %v378_v1 = vld [vmem:[%s580_s0 + $0x18] sm:$0xf]  ;;  %v379_v2 = vld [vmem:[%s580_s0 + $0x14] sm:$0xf] }
   0x2   :  { %129 = vst [vmem:[#allocation0 + $0x38] sm:$0xf] %v377_v0  ;;  %134 = vst [vmem:[#allocation0 + $0x30] sm:$0xf] %v378_v1  ;;  %v380_v3 = vld [vmem:[%s580_s0 + $0x10] sm:$0xf] }
   0x3   :  { %139 = vst [vmem:[#allocation0 + $0x28] sm:$0xf] %v379_v2  ;;  %v381_v4 = vld [vmem:[%s580_s0 + $0xc] sm:$0xf]  ;;  %v382_v5 = vld [vmem:[%s580_s0 + $0x8] sm:$0xf] }
   0x4   :  { %144 = vst [vmem:[#allocation0 + $0x20] sm:$0xf] %v380_v3  ;;  %149 = vst [vmem:[#allocation0 + $0x18] sm:$0xf] %v381_v4  ;;  %v383_v6 = vld [vmem:[%s580_s0 + $0x4] sm:$0xf] }
   0x5   :  { %154 = vst [vmem:[#allocation0 + $0x10] sm:$0xf] %v382_v5  ;;  %v159_v7 = vld [vmem:[%s580_s0] sm:$0xf]  ;;  %158 = vst [vmem:[#allocation0 + $0x8] sm:$0xf] %v383_v6 }
   0x6   :  { %160 = vst [vmem:[#allocation0] sm:$0xf] %v159_v7  ;;  %v361_v8 = vld [vmem:[%s580_s0 + $0x5c] sm:$0xf]  ;;  %v362_v9 = vld [vmem:[%s580_s0 + $0x58] sm:$0xf] }
   0x7   :  { %v363_v10 = vld [vmem:[%s580_s0 + $0x54] sm:$0xf]  ;;  %49 = vst [vmem:[#allocation0 + $0xb8] sm:$0xf] %v361_v8  ;;  %54 = vst [vmem:[#allocation0 + $0xb0] sm:$0xf] %v362_v9 }
   0x8   :  { %59 = vst [vmem:[#allocation0 + $0xa8] sm:$0xf] %v363_v10  ;;  %v364_v11 = vld [vmem:[%s580_s0 + $0x50] sm:$0xf]  ;;  %v365_v12 = vld [vmem:[%s580_s0 + $0x4c] sm:$0xf] }
   0x9   :  { %v366_v13 = vld [vmem:[%s580_s0 + $0x48] sm:$0xf]  ;;  %64 = vst [vmem:[#allocation0 + $0xa0] sm:$0xf] %v364_v11  ;;  %69 = vst [vmem:[#allocation0 + $0x98] sm:$0xf] %v365_v12 }
   0xa   :  { %74 = vst [vmem:[#allocation0 + $0x90] sm:$0xf] %v366_v13  ;;  %v367_v14 = vld [vmem:[%s580_s0 + $0x44] sm:$0xf]  ;;  %v368_v15 = vld [vmem:[%s580_s0 + $0x40] sm:$0xf] }
   0xb   :  { %v369_v16 = vld [vmem:[%s580_s0 + $0x3c] sm:$0xf]  ;;  %79 = vst [vmem:[#allocation0 + $0x88] sm:$0xf] %v367_v14  ;;  %84 = vst [vmem:[#allocation0 + $0x80] sm:$0xf] %v368_v15 }
   0xc   :  { %89 = vst [vmem:[#allocation0 + $0x78] sm:$0xf] %v369_v16  ;;  %v370_v17 = vld [vmem:[%s580_s0 + $0x38] sm:$0xf]  ;;  %v371_v18 = vld [vmem:[%s580_s0 + $0x34] sm:$0xf] }
   0xd   :  { %v372_v19 = vld [vmem:[%s580_s0 + $0x30] sm:$0xf]  ;;  %94 = vst [vmem:[#allocation0 + $0x70] sm:$0xf] %v370_v17  ;;  %99 = vst [vmem:[#allocation0 + $0x68] sm:$0xf] %v371_v18 }
   0xe   :  { %104 = vst [vmem:[#allocation0 + $0x60] sm:$0xf] %v372_v19  ;;  %v373_v20 = vld [vmem:[%s580_s0 + $0x2c] sm:$0xf]  ;;  %v374_v21 = vld [vmem:[%s580_s0 + $0x28] sm:$0xf] }
   0xf   :  { %v375_v22 = vld [vmem:[%s580_s0 + $0x24] sm:$0xf]  ;;  %109 = vst [vmem:[#allocation0 + $0x58] sm:$0xf] %v373_v20  ;;  %114 = vst [vmem:[#allocation0 + $0x50] sm:$0xf] %v374_v21 }
  0x10   :  { %119 = vst [vmem:[#allocation0 + $0x48] sm:$0xf] %v375_v22  ;;  %v376_v23 = vld [vmem:[%s580_s0 + $0x20] sm:$0xf]  ;;  %v353_v24 = vld [vmem:[%s580_s0 + $0x7c] sm:$0xf] }
  0x11   :  { %v354_v25 = vld [vmem:[%s580_s0 + $0x78] sm:$0xf]  ;;  %124 = vst [vmem:[#allocation0 + $0x40] sm:$0xf] %v376_v23  ;;  %9 = vst [vmem:[#allocation0 + $0xf8] sm:$0xf] %v353_v24 }
  0x12   :  { %v197_v26 = vld [vmem:[#allocation0 + $0x3] ss:$8 sm:$0xf0]   ;;  %14 = vst [vmem:[#allocation0 + $0xf0] sm:$0xf] %v354_v25  ;;  %vm288_vm4 = vcmask 523520  }
  0x13   :  { %v355_v27 = vld [vmem:[%s580_s0 + $0x74] sm:$0xf]  ;;  %v195_v28 = vld [vmem:[#allocation0 + $0x3] ss:$8 sm:$0xf]  }
  0x14   :  { %19 = vst [vmem:[#allocation0 + $0xe8] sm:$0xf] %v355_v27  ;;  %v356_v29 = vld [vmem:[%s580_s0 + $0x70] sm:$0xf]  ;;  %v199_v30 = vsel %vm163_vm0, %v197_v26, %v195_v28  ;;  %v357_v31 = vld [vmem:[%s580_s0 + $0x6c] sm:$0xf] }
  0x15   :  { %24 = vst [vmem:[#allocation0 + $0xe0] sm:$0xf] %v356_v29  ;;  %v358_v32 = vld [vmem:[%s580_s0 + $0x68] sm:$0xf]  ;;  %v359_v33 = vld [vmem:[%s580_s0 + $0x64] sm:$0xf]  ;;  %200 = vrot.lane.b32.xlu0 %v199_v30, %s399_s10 }
  0x16   :  { %v218_v34 = vld [vmem:[#allocation0 + $0x83] ss:$8 sm:$0xf0]   ;;  %29 = vst [vmem:[#allocation0 + $0xd8] sm:$0xf] %v357_v31 }
  0x17   :  { %34 = vst [vmem:[#allocation0 + $0xd0] sm:$0xf] %v358_v32  ;;  %39 = vst [vmem:[#allocation0 + $0xc8] sm:$0xf] %v359_v33  ;;  %v360_v35 = vld [vmem:[%s580_s0 + $0x60] sm:$0xf] }
  0x18   :  { %v216_v36 = vld [vmem:[#allocation0 + $0x83] ss:$8 sm:$0xf]   ;;  %44 = vst [vmem:[#allocation0 + $0xc0] sm:$0xf] %v360_v35  ;;  %s400_s0 = smov 64  }
  0x19   :  { %v220_v37 = vsel %vm163_vm0, %v218_v34, %v216_v36  ;;  %v207_v38 = vld [vmem:[#allocation0 + $0x43] ss:$8 sm:$0xf0]   ;;  %v238_v39 = vld [vmem:[#allocation0 + $0x2] ss:$8 sm:$0xf]  }
  0x1a   :  { %221 = vrot.lane.b32.xlu1 %v220_v37, %s399_s10  ;;  %v205_v40 = vld [vmem:[#allocation0 + $0x43] ss:$8 sm:$0xf]   ;;  %v240_v41 = vld [vmem:[#allocation0 + $0x2] ss:$8 sm:$0xf0]  }
  0x1b   :  { %v209_v42 = vsel %vm163_vm0, %v207_v38, %v205_v40  ;;  %v250_v44 = vld [vmem:[#allocation0 + $0x42] ss:$8 sm:$0xf0]   ;;  %v242_v45 = vsel %vm163_vm0, %v240_v41, %v238_v39  ;;  %v281_v52 = vld [vmem:[#allocation0 + $0x1] ss:$8 sm:$0xf]  }
  0x1c   :  { %210 = vrot.lane.b32.xlu0 %v209_v42, %s399_s10  ;;  %v229_v43 = vld [vmem:[#allocation0 + $0xc3] ss:$8 sm:$0xf0]   ;;  %v248_v46 = vld [vmem:[#allocation0 + $0x42] ss:$8 sm:$0xf]  }
  0x1d   :  { %v259_v47 = vld [vmem:[#allocation0 + $0x82] ss:$8 sm:$0xf]   ;;  %v252_v53 = vsel %vm163_vm0, %v250_v44, %v248_v46  ;;  %v283_v55 = vld [vmem:[#allocation0 + $0x1] ss:$8 sm:$0xf0]  }
  0x1e   :  { %v261_v49 = vld [vmem:[#allocation0 + $0x82] ss:$8 sm:$0xf0]   ;;  %v161_v56 = vld [vmem:[#allocation0] ss:$8 sm:$0xf]   ;;  %v285_v4 = vsel %vm163_vm0, %v283_v55, %v281_v52 }
  0x1f   :  { %v227_v48 = vld [vmem:[#allocation0 + $0xc3] ss:$8 sm:$0xf]   ;;  %v272_v51 = vld [vmem:[#allocation0 + $0xc2] ss:$8 sm:$0xf0]   ;;  %v263_v54 = vsel %vm163_vm0, %v261_v49, %v259_v47 }
  0x20   :  { %v231_v50 = vsel %vm163_vm0, %v229_v43, %v227_v48  ;;  %243 = vrot.lane.b32.xlu0 %v242_v45, %s400_s0  ;;  %v270_v57 = vld [vmem:[#allocation0 + $0xc2] ss:$8 sm:$0xf]   ;;  %v162_v58 = vld [vmem:[#allocation0] ss:$8 sm:$0xf0]  }
  0x21   :  { %232 = vrot.lane.b32.xlu1 %v231_v50, %s399_s10  ;;  %v164_v59 = vsel %vm163_vm0, %v162_v58, %v161_v56  ;;  %v177_v60 = vld [vmem:[#allocation0 + $0x80] ss:$8 sm:$0xf]   ;;  %v291_v62 = vld [vmem:[#allocation0 + $0x41] ss:$8 sm:$0xf]   ;;  %v274_v3 = vsel %vm163_vm0, %v272_v51, %v270_v57 }
  0x22   :  { %v179_v61 = vld [vmem:[#allocation0 + $0x80] ss:$8 sm:$0xf0]   ;;  %v293_v63 = vld [vmem:[#allocation0 + $0x41] ss:$8 sm:$0xf0]  }
  0x23   :  { %166 = vst.msk [vmem:[%s581_s1] sm:$0xff] %vm165_vm1, %v164_v59   ;;  %v181_v0 = vsel %vm163_vm0, %v179_v61, %v177_v60  ;;  %v168_v1 = vld [vmem:[#allocation0 + $0x40] ss:$8 sm:$0xf]   ;;  %v295_v11 = vsel %vm163_vm0, %v293_v63, %v291_v62 }
  0x24   :  { %264 = vrot.lane.b32.xlu0 %v263_v54, %s400_s0  ;;  %v170_v2 = vld [vmem:[#allocation0 + $0x40] ss:$8 sm:$0xf0]   ;;  %385 = vst.msk [vmem:[%s581_s1 + $0x10] sm:$0xff] %vm165_vm1, %v181_v0  }
  0x25   :  { %253 = vrot.lane.b32.xlu1 %v252_v53, %s400_s0  ;;  %v172_v5 = vsel %vm163_vm0, %v170_v2, %v168_v1  ;;  %v186_v6 = vld [vmem:[#allocation0 + $0xc0] ss:$8 sm:$0xf]   ;;  %v302_v8 = vld [vmem:[#allocation0 + $0x81] ss:$8 sm:$0xf]  }
  0x26   :  { %v188_v7 = vld [vmem:[#allocation0 + $0xc0] ss:$8 sm:$0xf0]   ;;  %v304_v9 = vld [vmem:[#allocation0 + $0x81] ss:$8 sm:$0xf0]  }
  0x27   :  { %384 = vst.msk [vmem:[%s581_s1 + $0x8] sm:$0xff] %vm165_vm1, %v172_v5   ;;  %v190_v10 = vsel %vm163_vm0, %v188_v7, %v186_v6  ;;  %v306_v12 = vsel %vm163_vm0, %v304_v9, %v302_v8  ;;  %v313_v13 = vld [vmem:[#allocation0 + $0xc1] ss:$8 sm:$0xf]  }
  0x28   :  { %386 = vst.msk [vmem:[%s581_s1 + $0x18] sm:$0xff] %vm165_vm1, %v190_v10   ;;  %286 = vrot.lane.b32.xlu0 %v285_v4, %s401_s21  ;;  %v315_v14 = vld [vmem:[#allocation0 + $0xc1] ss:$8 sm:$0xf0]  }
  0x29   :  { %275 = vrot.lane.b32.xlu1 %v274_v3, %s400_s0  ;;  %v317_v15 = vsel %vm163_vm0, %v315_v14, %v313_v13 }
  0x2c   :  { %307 = vrot.lane.b32.xlu0 %v306_v12, %s401_s21 }
  0x2d   :  { %296 = vrot.lane.b32.xlu1 %v295_v11, %s401_s21 }
  0x31   :  { %318 = vrot.lane.b32.xlu1 %v317_v15, %s401_s21 }
  0x87   :  { %v201_v16 = vpop.permute.xlu0 %200  }
  0x88   :  { %203 = vst.msk [vmem:[%s581_s1] sm:$0xff] %vm202_vm2, %v201_v16  }
  0x8c   :  { %v222_v17 = vpop.permute.xlu1 %221  }
  0x8d   :  { %388 = vst.msk [vmem:[%s581_s1 + $0x10] sm:$0xff] %vm202_vm2, %v222_v17  }
  0x8e   :  { %v211_v18 = vpop.permute.xlu0 %210  }
  0x8f   :  { %387 = vst.msk [vmem:[%s581_s1 + $0x8] sm:$0xff] %vm202_vm2, %v211_v18  }
  0x92   :  { %v244_v20 = vpop.permute.xlu0 %243  }
  0x93   :  { %v233_v19 = vpop.permute.xlu1 %232   ;;  %246 = vst.msk [vmem:[%s581_s1] sm:$0xff] %vm245_vm3, %v244_v20  }
  0x94   :  { %389 = vst.msk [vmem:[%s581_s1 + $0x18] sm:$0xff] %vm202_vm2, %v233_v19  }
  0x96   :  { %v265_v22 = vpop.permute.xlu0 %264  }
  0x97   :  { %v254_v21 = vpop.permute.xlu1 %253   ;;  %391 = vst.msk [vmem:[%s581_s1 + $0x10] sm:$0xff] %vm245_vm3, %v265_v22  }
  0x98   :  { %390 = vst.msk [vmem:[%s581_s1 + $0x8] sm:$0xff] %vm245_vm3, %v254_v21  }
  0x9a   :  { %v287_v24 = vpop.permute.xlu0 %286  }
  0x9b   :  { %v276_v23 = vpop.permute.xlu1 %275   ;;  %289 = vst.msk [vmem:[%s581_s1] sm:$0xff] %vm288_vm4, %v287_v24  }
  0x9c   :  { %392 = vst.msk [vmem:[%s581_s1 + $0x18] sm:$0xff] %vm245_vm3, %v276_v23  }
  0x9e   :  { %v308_v26 = vpop.permute.xlu0 %307  }
  0x9f   :  { %v297_v25 = vpop.permute.xlu1 %296   ;;  %394 = vst.msk [vmem:[%s581_s1 + $0x10] sm:$0xff] %vm288_vm4, %v308_v26  }
  0xa0   :  { %393 = vst.msk [vmem:[%s581_s1 + $0x8] sm:$0xff] %vm288_vm4, %v297_v25  }
  0xa3   :  { %v319_v27 = vpop.permute.xlu1 %318  }
  0xa4   :  { %395 = vst.msk [vmem:[%s581_s1 + $0x18] sm:$0xff] %vm288_vm4, %v319_v27  }

// kernel: task_aware_pallas.1
= control target key start
LH: loop header
LB: loop body
LE: loop exit
PB: predicated region body
PF: predicated region fallthrough
CT: control target
= control target key end

     0   :  { %v679_v34 = vmov 0.0   ;;  %vm157_vm0 = vcmask 1043456   ;;  %vm680_vm1 = vmmov 0   ;;  %vm153_vm2 = vcmask 31744   ;;  %s682_s26 = smov 64   ;;  %s882_s1 = inlined_call_operand.vmem [shape: f32[256,4], index: 1, kind: input, shape index: {}]   ;;  %s883_s0 = inlined_call_operand.vmem [shape: f32[2,256], index: 0, kind: input, shape index: {}]   ;;  %s884_s3 = inlined_call_operand.vmem [shape: f32[4,128], index: 3, kind: input, shape index: {}]   ;;  %s885_s2 = inlined_call_operand.vmem [shape: f32[1,4], index: 2, kind: input, shape index: {}]   ;;  %s886_s5 = inlined_call_operand.vmem [shape: f32[32,128], index: 5, kind: input, shape index: {}]   ;;  %s887_s4 = inlined_call_operand.vmem [shape: f32[1,128], index: 4, kind: input, shape index: {}]   ;;  %s888_s6 = inlined_call_operand.vmem [shape: f32[2,256], index: 6, kind: output, shape index: {}]  }
   0x1   :  { %v55_v0 = vld [vmem:[%s882_s1 + $0xf8] sm:$0xff]  ;;  %v54_v2 = vld [vmem:[%s882_s1 + $0xf0] sm:$0xff]  ;;  %v53_v4 = vld [vmem:[%s882_s1 + $0xe8] sm:$0xff]  ;;  %623 = vmatprep.subr.mxu1 %v679_v34  ;;  %625 = vmatprep.mubr.msk.f32.mxu1 %vm680_vm1, %v679_v34  ;;  %vm240_vm3 = vcmask 261120  }
   0x2   :  { %v39_v1 = vld [vmem:[%s882_s1 + $0x78] sm:$0xff]  ;;  %566 = vmatprep.subr.mxu0 %v55_v0  ;;  %v38_v3 = vld [vmem:[%s882_s1 + $0x70] sm:$0xff]  ;;  %v37_v5 = vld [vmem:[%s882_s1 + $0x68] sm:$0xff] }
   0x3   :  { %567 = vmatpush3.msra.mxu0 %v39_v1  ;;  %v52_v6 = vld [vmem:[%s882_s1 + $0xe0] sm:$0xff]  ;;  %v51_v8 = vld [vmem:[%s882_s1 + $0xd8] sm:$0xff]  ;;  %v50_v10 = vld [vmem:[%s882_s1 + $0xd0] sm:$0xff] }
   0x4   :  { %568 = vmatprep.subr.mxu0 %v54_v2  ;;  %v36_v7 = vld [vmem:[%s882_s1 + $0x60] sm:$0xff]  ;;  %v35_v9 = vld [vmem:[%s882_s1 + $0x58] sm:$0xff]  ;;  %v34_v11 = vld [vmem:[%s882_s1 + $0x50] sm:$0xff] }
   0x5   :  { %569 = vmatpush3.msra.mxu0 %v38_v3  ;;  %v49_v12 = vld [vmem:[%s882_s1 + $0xc8] sm:$0xff]  ;;  %v558_v13 = vld.sshfl [vmem:[%s883_s0] sm:$0x33 pattern:$0x76325410]  ;;  %v47_v18 = vld [vmem:[%s882_s1 + $0xb8] sm:$0xff] }
   0x6   :  { %570 = vmatprep.subr.mxu0 %v53_v4  ;;  %v33_v14 = vld [vmem:[%s882_s1 + $0x48] sm:$0xff]  ;;  %v71_v15 = vcombine.high %v558_v13, %v558_v13  ;;  %v48_v16 = vld [vmem:[%s882_s1 + $0xc0] sm:$0xff]  ;;  %v31_v19 = vld [vmem:[%s882_s1 + $0x38] sm:$0xff] }
   0x7   :  { %571 = vmatpush3.msra.mxu0 %v37_v5  ;;  %v32_v17 = vld [vmem:[%s882_s1 + $0x40] sm:$0xff]  ;;  %v46_v20 = vld [vmem:[%s882_s1 + $0xb0] sm:$0xff]  ;;  %v45_v22 = vld [vmem:[%s882_s1 + $0xa8] sm:$0xff] }
   0x8   :  { %572 = vmatprep.subr.mxu0 %v52_v6  ;;  %138 = vmatprep.mubr.f32.mxu0 %v71_v15  ;;  %v30_v21 = vld [vmem:[%s882_s1 + $0x30] sm:$0xff]  ;;  %v29_v23 = vld [vmem:[%s882_s1 + $0x28] sm:$0xff]  ;;  %v44_v24 = vld [vmem:[%s882_s1 + $0xa0] sm:$0xff] }
   0x9   :  { %573 = vmatpush3.msra.mxu0 %v36_v7  ;;  %v28_v25 = vld [vmem:[%s882_s1 + $0x20] sm:$0xff]  ;;  %v43_v26 = vld [vmem:[%s882_s1 + $0x98] sm:$0xff]  ;;  %v42_v28 = vld [vmem:[%s882_s1 + $0x90] sm:$0xff] }
   0xa   :  { %574 = vmatprep.subr.mxu0 %v51_v8  ;;  %v27_v27 = vld [vmem:[%s882_s1 + $0x18] sm:$0xff]  ;;  %v26_v29 = vld [vmem:[%s882_s1 + $0x10] sm:$0xff]  ;;  %v41_v30 = vld [vmem:[%s882_s1 + $0x88] sm:$0xff] }
   0xb   :  { %575 = vmatpush3.msra.mxu0 %v35_v9  ;;  %v25_v31 = vld [vmem:[%s882_s1 + $0x8] sm:$0xff]  ;;  %v40_v32 = vld [vmem:[%s882_s1 + $0x80] sm:$0xff]  ;;  %v236_v42 = vld [vmem:[%s886_s5 + $0x18] sm:$0xff] }
   0xc   :  { %576 = vmatprep.subr.mxu0 %v50_v10  ;;  %v24_v33 = vld [vmem:[%s882_s1] sm:$0xff]  ;;  %v235_v43 = vld [vmem:[%s886_s5 + $0x10] sm:$0xff]  ;;  %v234_v44 = vld [vmem:[%s886_s5 + $0x8] sm:$0xff] }
   0xd   :  { %577 = vmatpush3.msra.mxu0 %v34_v11  ;;  %v145_v35 = vld [vmem:[%s884_s3] sm:$0xf] }
   0xe   :  { %578 = vmatprep.subr.mxu0 %v49_v12  ;;  %624 = vmatpush3.msk.msra.mxu1 %vm157_vm0, %v145_v35  ;;  %v557_v37 = vld [vmem:[%s885_s2] ss:$0 sm:$0xff]  ;;  %v546_v0 = vld [vmem:[%s883_s0 + $0x2] sm:$0x3] }
   0xf   :  { %579 = vmatpush3.msra.mxu0 %v33_v14  ;;  %628 = vmatprep.subr.mxu1 %v679_v34  ;;  %v233_v45 = vld [vmem:[%s886_s5] sm:$0xff]  ;;  %s681_s5 = smov 32  }
  0x10   :  { %580 = vmatprep.subr.mxu0 %v48_v16  ;;  %v559_v46 = vld [vmem:[%s887_s4] ss:$0 sm:$0xff]  ;;  %s683_s4 = smov 96  }
  0x11   :  { %581 = vmatpush3.msra.mxu0 %v32_v17  ;;  %v539_v63 = vld [vmem:[%s883_s0] sm:$0x3] }
  0x12   :  { %582 = vmatprep.subr.mxu0 %v47_v18 }
  0x13   :  { %583 = vmatpush3.msra.mxu0 %v31_v19 }
  0x14   :  { %584 = vmatprep.subr.mxu0 %v46_v20 }
  0x15   :  { %585 = vmatpush3.msra.mxu0 %v30_v21 }
  0x16   :  { %586 = vmatprep.subr.mxu0 %v45_v22 }
  0x17   :  { %587 = vmatpush3.msra.mxu0 %v29_v23 }
  0x18   :  { %588 = vmatprep.subr.mxu0 %v44_v24 }
  0x19   :  { %589 = vmatpush3.msra.mxu0 %v28_v25 }
  0x1a   :  { %590 = vmatprep.subr.mxu0 %v43_v26 }
  0x1b   :  { %591 = vmatpush3.msra.mxu0 %v27_v27 }
  0x1c   :  { %592 = vmatprep.subr.mxu0 %v42_v28 }
  0x1d   :  { %593 = vmatpush3.msra.mxu0 %v26_v29 }
  0x1e   :  { %594 = vmatprep.subr.mxu0 %v41_v30 }
  0x1f   :  { %595 = vmatpush3.msra.mxu0 %v25_v31 }
  0x20   :  { %596 = vmatprep.subr.mxu0 %v40_v32 }
  0x21   :  { %597 = vmatpush3.msra.mxu0 %v24_v33 }
  0x22   :  { %139 = vmatmul.mubr.f32.vlgmr.msra.gmra.mxu0 %v558_v13 }
  0xe2   :  { %v598_v36 = vpop.f32.mrf.mxu0 }
  0xe4   :  { %v599_v38 = vpop.f32.mrf.mxu0 }
  0xe5   :  { %v600_v39 = vadd.f32 %v599_v38, %v598_v36 }
  0xe7   :  { %v141_v40 = vadd.f32 %v600_v39, %v557_v37 }
  0xe9   :  { %v144_v41 = vmax.f32 %v141_v40, 0.0 }
  0xeb   :  { %626 = vmatmul.mubr.msk.f32.vlgmr.msra.gmra.mxu1 %vm153_vm2, %v144_v41 }
  0xec   :  { %636 = vmatprep.mubr.msk.f32.mxu1 %vm680_vm1, %v679_v34  ;;  %629 = vmatpush3.msra.mxu1 %v236_v42 }
  0xed   :  { %630 = vmatprep.subr.mxu1 %v679_v34 }
  0xee   :  { %631 = vmatpush3.msra.mxu1 %v235_v43 }
  0xef   :  { %632 = vmatprep.subr.mxu1 %v679_v34 }
  0xf0   :  { %633 = vmatpush3.msra.mxu1 %v234_v44 }
  0xf1   :  { %634 = vmatprep.subr.mxu1 %v679_v34 }
  0xf2   :  { %635 = vmatpush3.msra.mxu1 %v233_v45 }
  0xf3   :  { %639 = vmatprep.subr.mxu1 %v679_v34 }
 0x1ab   :  { %v227_v47 = vpop.f32.mrf.mxu1 }
 0x1ac   :  { %v228_v48 = vadd.f32 %v559_v46, %v227_v47 }
 0x1ad   :  { %v627_v49 = vpop.f32.mrf.mxu1 }
 0x1ae   :  { %v231_v50 = vmul.f32 0.5, %v228_v48 }
 0x1b0   :  { %677 = vtanh.f32 %v231_v50 }
 0x1bd   :  { %v678_v51 = vpop.eup %677 }
 0x1be   :  { %v238_v52 = vmul.f32 0.5, %v678_v51  ;;  %v237_v53 = vadd.f32 1.0, %v678_v51 }
 0x1c0   :  { %465 = vrot.lane.b32.xlu1 %v238_v52, %s681_s5  ;;  %315 = vrot.lane.b32.xlu0 %v238_v52, %s682_s26 }
 0x1c1   :  { %637 = vmatmul.mubr.msk.f32.vlgmr.msra.gmra.mxu1 %vm240_vm3, %v237_v53 }
 0x1c2   :  { %640 = vmatpush3.msra.mxu1 %v236_v42  ;;  %647 = vmatprep.mubr.msk.f32.mxu1 %vm680_vm1, %v679_v34 }
 0x1c3   :  { %641 = vmatprep.subr.mxu1 %v679_v34 }
 0x1c4   :  { %391 = vrot.lane.b32.xlu0 %v678_v51, %s683_s4  ;;  %642 = vmatpush3.msra.mxu1 %v235_v43 }
 0x1c5   :  { %643 = vmatprep.subr.mxu1 %v679_v34 }
 0x1c6   :  { %644 = vmatpush3.msra.mxu1 %v234_v44 }
 0x1c7   :  { %645 = vmatprep.subr.mxu1 %v679_v34 }
 0x1c8   :  { %646 = vmatpush3.msra.mxu1 %v233_v45 }
 0x1c9   :  { %650 = vmatprep.subr.mxu1 %v679_v34 }
 0x232   :  { %v316_v54 = vpop.permute.xlu0 %315  ;;  %v466_v56 = vpop.permute.xlu1 %465 }
 0x233   :  { %648 = vmatmul.mubr.msk.f32.vlgmr.msra.gmra.mxu1 %vm240_vm3, %v316_v54 }
 0x234   :  { %651 = vmatpush3.msra.mxu1 %v236_v42  ;;  %658 = vmatprep.mubr.msk.f32.mxu1 %vm680_vm1, %v679_v34 }
 0x235   :  { %652 = vmatprep.subr.mxu1 %v679_v34 }
 0x236   :  { %653 = vmatpush3.msra.mxu1 %v235_v43  ;;  %v392_v55 = vpop.permute.xlu0 %391 }
 0x237   :  { %654 = vmatprep.subr.mxu1 %v679_v34 }
 0x238   :  { %655 = vmatpush3.msra.mxu1 %v234_v44 }
 0x239   :  { %656 = vmatprep.subr.mxu1 %v679_v34 }
 0x23a   :  { %657 = vmatpush3.msra.mxu1 %v233_v45 }
 0x23b   :  { %659 = vmatmul.mubr.msk.f32.vlgmr.msra.gmra.mxu1 %vm240_vm3, %v392_v55  ;;  %661 = vmatprep.subr.mxu1 %v679_v34 }
 0x23c   :  { %662 = vmatpush3.msra.mxu1 %v236_v42  ;;  %669 = vmatprep.mubr.msk.f32.mxu1 %vm680_vm1, %v679_v34 }
 0x23d   :  { %663 = vmatprep.subr.mxu1 %v679_v34 }
 0x23e   :  { %664 = vmatpush3.msra.mxu1 %v235_v43 }
 0x23f   :  { %665 = vmatprep.subr.mxu1 %v679_v34 }
 0x240   :  { %666 = vmatpush3.msra.mxu1 %v234_v44 }
 0x241   :  { %667 = vmatprep.subr.mxu1 %v679_v34 }
 0x242   :  { %668 = vmatpush3.msra.mxu1 %v233_v45 }
 0x243   :  { %670 = vmatmul.mubr.msk.f32.vlgmr.msra.gmra.mxu1 %vm240_vm3, %v466_v56 }
 0x281   :  { %v310_v57 = vpop.f32.mrf.mxu1 }
 0x282   :  { %v540_v1 = vmul.f32 %v539_v63, %v310_v57  ;;  %v547_v2 = vmul.f32 %v546_v0, %v310_v57 }
 0x283   :  { %v638_v58 = vpop.f32.mrf.mxu1 }
 0x2f3   :  { %v385_v59 = vpop.f32.mrf.mxu1 }
 0x2f4   :  { %v541_v6 = vadd.f32 %v540_v1, %v385_v59  ;;  %v548_v7 = vadd.f32 %v547_v2, %v385_v59 }
 0x2f5   :  { %v649_v60 = vpop.f32.mrf.mxu1 }
 0x2fb   :  { %v461_v61 = vpop.f32.mrf.mxu1 }
 0x2fc   :  { %v542_v3 = vmul.f32 %v539_v63, %v461_v61  ;;  %v549_v4 = vmul.f32 %v546_v0, %v461_v61 }
 0x2fd   :  { %v660_v62 = vpop.f32.mrf.mxu1 }
 0x303   :  { %v535_v5 = vpop.f32.mrf.mxu1 }
 0x304   :  { %v543_v8 = vadd.f32 %v542_v3, %v535_v5  ;;  %v550_v9 = vadd.f32 %v549_v4, %v535_v5 }
 0x305   :  { %v671_v10 = vpop.f32.mrf.mxu1 }
 0x306   :  { %v544_v11 = vmax.f32 %v541_v6, %v543_v8  ;;  %v551_v12 = vmax.f32 %v548_v7, %v550_v9 }
 0x308   :  { %545 = vst [vmem:[%s888_s6] sm:$0x3] %v544_v11  ;;  %552 = vst [vmem:[%s888_s6 + $0x2] sm:$0x3] %v551_v12 }

</bundles_post_ra>
